<compile_context>
chip_gen: v7x
topology: tpu7x:2x2x1
jax: 0.10.0
libtpu: 0.0.40
codegen_flags: <defaults>
</compile_context>

<pallas_src>
import numpy as np

import jax
import jax.numpy as jnp
from jax.experimental import pallas as pl
from jax.experimental.pallas import tpu as pltpu


def _copy_kernel(x_ref, o_ref):
    # Pure lane-dense tile copy (HBM -> VMEM -> vreg -> VMEM -> HBM).
    o_ref[...] = x_ref[...]


def _sublane_align(dtype) -> int:
    # 8 for 32-bit, 16 for 16-bit, 32 for 8-bit dtypes (packed sublanes).
    itemsize = jnp.dtype(dtype).itemsize
    return max(8, 32 // itemsize)


def _pick_block(dim: int, target: int, align: int) -> int:
    """Largest legal block size <= target for a dimension of size `dim`.

    Legal = full extent, or a multiple of `align`.
    """
    if dim <= target:
        return dim
    return max((target // align) * align, align)


def _tile_target_bytes() -> int:
    """Generation-aware per-tile byte target.

    Double-buffered in+out footprint is 4x the tile, so keep it <= VMEM/4:
    v5e/v6e (128 MiB physical) -> 8 MiB tiles, v7x (64 MiB) -> 4 MiB tiles.
    """
    try:
        vmem = getattr(pltpu.get_tpu_info(), "vmem_capacity_bytes", 64 << 20)
    except Exception:  # interpret mode / older runtimes
        vmem = 64 << 20
    return int(min(8 << 20, max(2 << 20, vmem // 16)))


def _slab_shape(total: int):
    """Pick a lane-dense (rows, L) factorization of `total`, or None.

    Prefers the largest L in [128, 8192] (multiple of 128) that divides
    `total` while keeping rows >= 8 so vregs use all sublanes.
    """
    if total <= 0 or total % 128 != 0:
        return None
    best = None
    for lane_width in (8192, 4096, 2048, 1024, 512, 256, 128):
        if total % lane_width == 0:
            if best is None:
                best = lane_width
            if total // lane_width >= 8:
                return total // lane_width, lane_width
    return total // best, best


def flatten_layer(x: jax.Array, *, force_pallas: bool = False) -> jax.Array:
    """FlattenLayer.forward: x.view(N, -1).

    Default path is the metadata-only reshape (zero HBM traffic).  Set
    force_pallas=True to route the copy through the Pallas kernel (fusion
    site / validation).
    """
    n = x.shape[0]
    flat = int(np.prod(x.shape[1:])) if x.ndim > 1 else 1
    total = n * flat

    if not force_pallas or total == 0:
        # Fast path: flatten of a contiguous array is metadata-only in XLA.
        return x.reshape(n, flat)

    dtype = x.dtype
    itemsize = jnp.dtype(dtype).itemsize
    sub_align = _sublane_align(dtype)
    tile_bytes = _tile_target_bytes()

    slab = _slab_shape(total)
    if slab is not None:
        # Lane-dense slab view of the whole tensor (metadata-only reshape):
        # guarantees 128-aligned, unmasked stores regardless of (N, flat).
        rows, lane_w = slab
        x2 = x.reshape(rows, lane_w)
        bf = lane_w
        bn = _pick_block(rows, max(1, tile_bytes // (bf * itemsize)), sub_align)
        out_rows, out_cols = rows, lane_w
    else:
        # Awkward remainder (total not a multiple of 128): tile the (N, flat)
        # view directly; edge blocks are masked but still correct.
        x2 = x.reshape(n, flat)
        bf = _pick_block(flat, 2048, 128)
        bn = _pick_block(n, max(1, tile_bytes // (bf * itemsize)), sub_align)
        out_rows, out_cols = n, flat

    grid = (pl.cdiv(out_rows, bn), pl.cdiv(out_cols, bf))
    tile_footprint = 4 * bn * bf * itemsize  # double-buffered input + output

    out = pl.pallas_call(
        _copy_kernel,
        out_shape=jax.ShapeDtypeStruct((out_rows, out_cols), dtype),
        grid_spec=pltpu.PrefetchScalarGridSpec(
            num_scalar_prefetch=0,
            grid=grid,
            in_specs=[pl.BlockSpec((bn, bf), lambda i, j: (i, j))],
            out_specs=pl.BlockSpec((bn, bf), lambda i, j: (i, j)),
        ),
        compiler_params=pltpu.CompilerParams(
            dimension_semantics=("parallel", "parallel"),
            vmem_limit_bytes=tile_footprint + (16 << 20),
        ),
        cost_estimate=pl.CostEstimate(
            flops=0,
            transcendentals=0,
            bytes_accessed=2 * total * itemsize,
        ),
    )(x2)

    # Metadata-only reshape back to the module's output shape.
    return out.reshape(n, flat)


if __name__ == "__main__":
    key = jax.random.PRNGKey(0)
    # Small NCHW input consistent with a conv-style feature map.
    x = jax.random.normal(key, (2, 4, 16, 16), dtype=jnp.float32)

    y_fast = flatten_layer(x)                       # metadata-only fast path
    y_kern = flatten_layer(x, force_pallas=True)    # exercise the Pallas kernel
    jax.block_until_ready(y_kern)

    # Correctness check against the pure-JAX reference (== torch .view(N, -1)).
    y_ref = x.reshape(x.shape[0], -1)
    assert y_kern.shape == (2, 4 * 16 * 16)
    assert y_kern.dtype == x.dtype
    assert jnp.array_equal(y_kern, y_ref)
    assert jnp.array_equal(y_fast, y_ref)

    print("KERNEL_OK")
</pallas_src>

<mosaic_0001>
module attributes {stable_mosaic.version = 11 : i64} {
  func.func @_copy_kernel(%arg0: i32, %arg1: i32, %arg2: memref<8x256xf32, #tpu.memory_space<vmem>>, %arg3: memref<8x256xf32, #tpu.memory_space<vmem>>) attributes {dimension_semantics = [#tpu.dimension_semantics<parallel>, #tpu.dimension_semantics<parallel>], iteration_bounds = array<i64: 1, 1>, scalar_prefetch = 0 : i64, scratch_operands = 0 : i64, tpu.core_type = #tpu.core_type<tc>, window_params = [{transform_indices = @transform_0, window_bounds = array<i64: 8, 256>}, {transform_indices = @transform_1, window_bounds = array<i64: 8, 256>}]} {
    %c0 = arith.constant 0 : index
    %c0_0 = arith.constant 0 : index
    %0 = vector.load %arg2[%c0, %c0_0] : memref<8x256xf32, #tpu.memory_space<vmem>>, vector<8x256xf32>
    %c0_1 = arith.constant 0 : index
    %c0_2 = arith.constant 0 : index
    %1 = vector.load %arg3[%c0_1, %c0_2] : memref<8x256xf32, #tpu.memory_space<vmem>>, vector<8x256xf32>
    tpu.vector_store %arg3[%c0_1, %c0_2], %0 {strides = array<i32>} : memref<8x256xf32, #tpu.memory_space<vmem>>, vector<8x256xf32>,
    return
  }
  func.func @transform_0(%arg0: i32, %arg1: i32) -> (i32, i32) {
    %c0_i32 = arith.constant 0 : i32
    return %arg0, %arg1 : i32, i32
  }
  func.func @transform_1(%arg0: i32, %arg1: i32) -> (i32, i32) {
    %c0_i32 = arith.constant 0 : i32
    return %arg0, %arg1 : i32, i32
  }
}

</mosaic_0001>

<bundles_post_ra>
// kernel: tpu_custom_call.1
= control target key start
LH: loop header
LB: loop body
LE: loop exit
PB: predicated region body
PF: predicated region fallthrough
CT: control target
= control target key end

     0   :  { %6 = vsyncpa [#allocation3], 0  ;;  %s126_s0 = inlined_call_operand.hbm [shape: f32[8,256], index: 0, kind: input, shape index: {}]   ;;  %s127_s1 = inlined_call_operand.hbm [shape: f32[8,256], index: 1, kind: output, shape index: {}]  }
   0x1   :  { %7 = vsyncpa [#allocation4], 0  ;;  %s90_s6 = smov [#allocation2]   ;;  %s42_s10 = scalar_lea.hbm %s126_s0, 256 }
   0x2   :  { %s14_s7 = sshll.u32 %s90_s6, 4  ;;  %p43_p0 = scmp.ne.s32.totalorder %s126_s0, %s42_s10  ;;  %s15_s7 = int_to_ptr.vmem [resolvable:$true] %s14_s7 }
   0x3   :  { %p46_p1 = scmp.lt.u32.totalorder %s42_s10, %s126_s0 }
   0x5   :  { %p48_p2 = pnand %p46_p1, %p43_p0 }
   0x7   :  { %51 = shalt.err (!%p48_p2)
}
   0x8   :  { %s52_s15 = scalar_lea.vmem %s15_s7, 256  ;;  %p57_p4 = scmp.lt.s32.totalorder %s15_s7, %s15_s7 }
   0x9   :  { %p53_p3 = scmp.ne.s32.totalorder %s15_s7, %s52_s15  ;;  %p58_p5 = scmp.lt.s32.totalorder %s52_s15, %s52_s15 }
   0xb   :  { %p59_p6 = por %p58_p5, %p57_p4 }
   0xd   :  { %p60_p7 = pnand %p59_p6, %p53_p3 }
   0xf   :  { %63 = shalt.err (!%p60_p7)
}
  0x10   :  { %17 = dma.hbm_to_vmem [thread:$0]  %s126_s0, 256, %s15_s7, [#allocation3]  }
  0x11   :  { %86 = dma.done.wait [#allocation3], 256  }
  0x12   :  { %87 = vsyncadd [#allocation3], 4294967040  ;;  %s91_s18 = smov [#allocation5]   ;;  %v21_v0 = vld [vmem:[#allocation2] sm:$0xff]  ;;  %v22_v1 = vld [vmem:[#allocation2 + $0x8] sm:$0xff] }
  0x13   :  { %s31_s19 = sshll.u32 %s91_s18, 4  ;;  %23 = vst [vmem:[#allocation5] sm:$0xff] %v21_v0  ;;  %24 = vst [vmem:[#allocation5 + $0x8] sm:$0xff] %v22_v1  ;;  %s32_s19 = int_to_ptr.vmem [resolvable:$true] %s31_s19 }
  0x14   :  { %s64_s20 = scalar_lea.vmem %s32_s19, 256  ;;  %p69_p9 = scmp.lt.s32.totalorder %s32_s19, %s32_s19 }
  0x15   :  { %p65_p8 = scmp.ne.s32.totalorder %s32_s19, %s64_s20  ;;  %p70_p10 = scmp.lt.s32.totalorder %s64_s20, %s64_s20 }
  0x17   :  { %p71_p11 = por %p70_p10, %p69_p9 }
  0x19   :  { %p72_p12 = pnand %p71_p11, %p65_p8 }
  0x1b   :  { %75 = shalt.err (!%p72_p12)
}
  0x1c   :  { %s76_s0 = scalar_lea.hbm %s127_s1, 256 }
  0x1d   :  { %p77_p13 = scmp.ne.s32.totalorder %s127_s1, %s76_s0  ;;  %p80_p0 = scmp.lt.u32.totalorder %s76_s0, %s127_s1 }
  0x1f   :  { %p82_p1 = pnand %p80_p0, %p77_p13 }
  0x21   :  { %85 = shalt.err (!%p82_p1)
}
  0x22   :  { %34 = dma.vmem_to_hbm [thread:$0]  %s32_s19, 256, %s127_s1, [#allocation4]  }
  0x23   :  { %88 = dma.done.wait [#allocation4], 256  }
  0x24   :  { %89 = vsyncadd [#allocation4], 4294967040 }
  0x25   :  { %38 = vsyncpa [#allocation3], 1 }
  0x26   :  { %39 = vsyncpa [#allocation4], 1 }

</bundles_post_ra>
